<compile_context>
chip_gen: v6e
topology: v6e:2x2x1
jax: 0.10.0
libtpu: 0.0.40
codegen_flags: <defaults>
</compile_context>

<pallas_src>
import jax
import jax.numpy as jnp
from jax.experimental import pallas as pl
from jax.experimental.pallas import tpu as pltpu


# ----------------------------------------------------------------------------
# Bilinear sampling helpers (glue, plain JAX).  Semantics match
# F.grid_sample(input, 2*p - 1, mode='bilinear', padding_mode='zeros',
# align_corners=False) for points p in [0, 1].
# ----------------------------------------------------------------------------
def _bilinear_corners(points, H, W):
    """points: (B, N, 2) with (x, y) in [0, 1] -> 4 (xi, yi, weight) corner tuples."""
    x = points[..., 0] * W - 0.5
    y = points[..., 1] * H - 0.5
    x0f = jnp.floor(x)
    y0f = jnp.floor(y)
    wx1 = x - x0f
    wy1 = y - y0f
    wx0 = 1.0 - wx1
    wy0 = 1.0 - wy1
    x0 = x0f.astype(jnp.int32)
    y0 = y0f.astype(jnp.int32)
    x1 = x0 + 1
    y1 = y0 + 1
    return (
        (x0, y0, wx0 * wy0),
        (x1, y0, wx1 * wy0),
        (x0, y1, wx0 * wy1),
        (x1, y1, wx1 * wy1),
    )


def point_sample(inp, points):
    """Reference bilinear sampler: inp (B, C, H, W), points (B, N, 2) -> (B, C, N)."""
    B, C, H, W = inp.shape
    flat = inp.reshape(B, C, H * W)
    acc = jnp.zeros((B, C, points.shape[1]), inp.dtype)
    for xi, yi, w in _bilinear_corners(points, H, W):
        valid = ((xi >= 0) & (xi < W) & (yi >= 0) & (yi < H)).astype(inp.dtype)
        idx = jnp.clip(yi, 0, H - 1) * W + jnp.clip(xi, 0, W - 1)      # (B, N)
        vals = jnp.take_along_axis(flat, idx[:, None, :], axis=2)      # (B, C, N)
        acc = acc + vals * (w * valid)[:, None, :]
    return acc


def _build_sampling_matrix(points, H, W, n_padded):
    """Dense bilinear sampling matrix S: (B, H*W, n_padded) such that
    point_sample(inp, points) == inp.reshape(B, C, H*W) @ S (columns >= N are zero).

    Built with a vectorized one-hot construction (no XLA scatter)."""
    B, N, _ = points.shape
    hw = H * W
    pos = jax.lax.broadcasted_iota(jnp.int32, (1, hw, 1), 1)           # (1, HW, 1)
    cols = jnp.zeros((B, hw, N), points.dtype)
    for xi, yi, w in _bilinear_corners(points, H, W):
        valid = ((xi >= 0) & (xi < W) & (yi >= 0) & (yi < H)).astype(points.dtype)
        idx = jnp.clip(yi, 0, H - 1) * W + jnp.clip(xi, 0, W - 1)      # (B, N)
        onehot = (pos == idx[:, None, :]).astype(points.dtype)         # (B, HW, N)
        cols = cols + onehot * (w * valid)[:, None, :]
    return jnp.pad(cols, ((0, 0), (0, 0), (0, n_padded - N)))


# ----------------------------------------------------------------------------
# sampling_points, training branch.
# TODO(synk): RNG + top-k point selection is left in plain JAX glue (no clean
# Pallas equivalent for data-dependent top-k / random over-generation).
# ----------------------------------------------------------------------------
def sampling_points_train(key, mask, N, k=3, beta=0.75):
    B = mask.shape[0]
    k_over, k_cov = jax.random.split(key)
    mask_sorted = -jnp.sort(-mask, axis=1)                    # descending along channels
    over_gen = jax.random.uniform(k_over, (B, k * N, 2), mask.dtype)
    over_map = point_sample(mask_sorted, over_gen)            # (B, C, k*N)
    uncertainty = -(over_map[:, 0] - over_map[:, 1])          # (B, k*N)
    n_imp = int(beta * N)
    _, idx = jax.lax.top_k(uncertainty, n_imp)                # (B, n_imp)
    importance = jnp.take_along_axis(over_gen, idx[:, :, None], axis=1)
    coverage = jax.random.uniform(k_cov, (B, N - n_imp, 2), mask.dtype)
    return jnp.concatenate([importance, coverage], axis=1)    # (B, N, 2)


# ----------------------------------------------------------------------------
# Pallas kernel: single folded matmul  rend = relu(feat @ S_tile)
#   feat_ref: (nc, HWtot)   s_ref: (HWtot, TILE_N)   rend_ref: (nc, TILE_N)
# ----------------------------------------------------------------------------
def _point_render_kernel(feat_ref, s_ref, rend_ref):
    pre = jnp.dot(feat_ref[...], s_ref[...], preferred_element_type=jnp.float32)
    rend_ref[...] = jnp.maximum(pre, 0.0).astype(rend_ref.dtype)


def _pick_tile_n(n_padded, hw_total, nc, itemsize, budget_bytes=40 * 1024 * 1024):
    """Largest lane-multiple tile that keeps double-buffered S + out tiles under the
    VMEM budget (v7x-safe), then shrunk while it still fails to give >=4 grid steps."""
    tile = 128
    for cand in (512, 256, 128):
        if n_padded % cand:
            continue
        if 2 * (hw_total + nc) * cand * itemsize <= budget_bytes:
            tile = cand
            break
    while tile > 128 and (n_padded // tile) < 4 and n_padded % (tile // 2) == 0:
        tile //= 2
    return tile


def _rend_pallas(x, out, points, w_mlp):
    B, C, H, W = out.shape
    _, E, Hx, Wx = x.shape
    N = points.shape[1]
    nc = w_mlp.shape[0]
    assert w_mlp.shape[1] == C + E

    hwo = H * W
    hwx = Hx * Wx
    hw_total = hwo + hwx
    itemsize = jnp.dtype(out.dtype).itemsize

    # Lane-dense point axis: pad N up to a multiple of 128.
    n_padded = max(128, ((N + 127) // 128) * 128)
    tile_n = _pick_tile_n(n_padded, hw_total, nc, itemsize)

    # Fold the 1x1 conv into the features (tiny per-call matmuls in glue):
    #   rend = relu(Wc @ (out_flat @ S_out) + Wf @ (x_flat @ S_x))
    #        = relu([Wc @ out_flat | Wf @ x_flat] @ [S_out ; S_x])
    out_flat = out.reshape(B, C, hwo)
    x_flat = x.reshape(B, E, hwx)
    feat = jnp.concatenate(
        [
            jnp.einsum("oc,bck->bok", w_mlp[:, :C], out_flat),
            jnp.einsum("oe,bek->bok", w_mlp[:, C:], x_flat),
        ],
        axis=-1,
    )                                                          # (B, nc, HWtot)

    s = jnp.concatenate(
        [
            _build_sampling_matrix(points, H, W, n_padded),    # (B, HWo, Np)
            _build_sampling_matrix(points, Hx, Wx, n_padded),  # (B, HWx, Np)
        ],
        axis=1,
    )                                                          # (B, HWtot, Np)

    # VMEM residency per step: double-buffered feat (changes per batch), S tile, out tile.
    vmem_need = (2 * nc * hw_total + 2 * hw_total * tile_n + 2 * nc * tile_n) * itemsize
    vmem_limit = int(min(max(2 * vmem_need, 16 * 1024 * 1024), 48 * 1024 * 1024))

    cost = pl.CostEstimate(
        flops=2 * B * nc * hw_total * n_padded,
        transcendentals=0,
        bytes_accessed=int((feat.size + s.size + B * nc * n_padded) * itemsize),
    )

    rend_padded = pl.pallas_call(
        _point_render_kernel,
        out_shape=jax.ShapeDtypeStruct((B, nc, n_padded), out.dtype),
        grid_spec=pl.GridSpec(
            grid=(B, n_padded // tile_n),
            in_specs=[
                pl.BlockSpec((None, nc, hw_total), lambda b, n: (b, 0, 0)),
                pl.BlockSpec((None, hw_total, tile_n), lambda b, n: (b, 0, n)),
            ],
            out_specs=pl.BlockSpec((None, nc, tile_n), lambda b, n: (b, 0, n)),
        ),
        compiler_params=pltpu.CompilerParams(
            dimension_semantics=("parallel", "parallel"),
            vmem_limit_bytes=vmem_limit,
        ),
        cost_estimate=cost,
    )(feat, s)
    return rend_padded[:, :, :N]


def point_render_forward(x, res, out, w_mlp, *, key, k=3, beta=0.75):
    """Training forward of PointRender. Returns {'rend': (B, nc, N), 'points': (B, N, 2)}."""
    B, C, H, W = out.shape
    N = (H * W) // 16
    points = sampling_points_train(key, jnp.square(out - res), N, k=k, beta=beta)
    rend = _rend_pallas(x, out, points, w_mlp)
    return {"rend": rend, "points": points}


# ----------------------------------------------------------------------------
# Pure-JAX reference for the kernel-covered (deterministic) part of forward.
# ----------------------------------------------------------------------------
def _rend_reference(x, out, points, w_mlp):
    coarse = point_sample(out, points)
    fine = point_sample(x, points)
    feat = jnp.concatenate([coarse, fine], axis=1)            # (B, C+E, N)
    rend = jnp.einsum("oc,bcn->bon", w_mlp, feat)             # 1x1 conv, no bias
    return jnp.maximum(rend, 0.0)


if __name__ == "__main__":
    key = jax.random.PRNGKey(0)
    k_x, k_res, k_out, k_w, k_pts = jax.random.split(key, 5)

    # Small shapes consistent with the module (num_classes=3; embed shrunk 96 -> 32).
    B, num_classes, H, W = 2, 3, 16, 16
    embed, Hx, Wx = 32, 32, 32

    x = jax.random.normal(k_x, (B, embed, Hx, Wx), jnp.float32)
    res = jax.random.normal(k_res, (B, num_classes, H, W), jnp.float32)
    out = jax.random.normal(k_out, (B, num_classes, H, W), jnp.float32)
    # nn.Conv1d(embed + num_classes, num_classes, 1, bias=False) weight (kernel dim squeezed).
    w_mlp = 0.1 * jax.random.normal(k_w, (num_classes, embed + num_classes), jnp.float32)

    result = point_render_forward(x, res, out, w_mlp, key=k_pts, k=3, beta=0.75)
    rend = jax.block_until_ready(result["rend"])
    points = result["points"]

    N = (H * W) // 16
    assert rend.shape == (B, num_classes, N), rend.shape
    assert points.shape == (B, N, 2), points.shape

    # Slightly looser atol than rev 1: folding the 1x1 conv into the features
    # reassociates the f32 contraction (still well within fp32 rounding).
    rend_expected = _rend_reference(x, out, points, w_mlp)
    assert jnp.allclose(rend, rend_expected, atol=2e-5, rtol=1e-5), float(
        jnp.max(jnp.abs(rend - rend_expected)))

    print("KERNEL_OK")
</pallas_src>

<mosaic_0001>
module attributes {stable_mosaic.version = 11 : i64} {
  func.func @_point_render_kernel(%arg0: i32, %arg1: i32, %arg2: memref<1x3x1280xf32, #tpu.memory_space<vmem>>, %arg3: memref<1x1280x128xf32, #tpu.memory_space<vmem>>, %arg4: memref<1x3x128xf32, #tpu.memory_space<vmem>>) attributes {dimension_semantics = [#tpu.dimension_semantics<parallel>, #tpu.dimension_semantics<parallel>], iteration_bounds = array<i64: 2, 1>, scalar_prefetch = 0 : i64, scratch_operands = 0 : i64, tpu.core_type = #tpu.core_type<tc>, window_params = [{transform_indices = @transform_0, window_bounds = array<i64: 1, 3, 1280>}, {transform_indices = @transform_1, window_bounds = array<i64: 1, 1280, 128>}, {transform_indices = @transform_2, window_bounds = array<i64: 1, 3, 128>}]} {
    %c0 = arith.constant 0 : index
    %c0_0 = arith.constant 0 : index
    %c0_1 = arith.constant 0 : index
    %0 = vector.load %arg2[%c0, %c0_0, %c0_1] : memref<1x3x1280xf32, #tpu.memory_space<vmem>>, vector<1x3x1280xf32>
    %1 = vector.shape_cast %0 : vector<1x3x1280xf32> to vector<3x1280xf32>
    %c0_2 = arith.constant 0 : index
    %c0_3 = arith.constant 0 : index
    %c0_4 = arith.constant 0 : index
    %2 = vector.load %arg3[%c0_2, %c0_3, %c0_4] : memref<1x1280x128xf32, #tpu.memory_space<vmem>>, vector<1x1280x128xf32>
    %3 = vector.shape_cast %2 : vector<1x1280x128xf32> to vector<1280x128xf32>
    %cst = arith.constant dense<0.000000e+00> : vector<3x128xf32>
    %4 = tpu.matmul %1, %3, %cst {dimension_numbers = #tpu.dot_dimension_numbers<[1], [0], [0], [1], [0, 0, 1, 1], [], []>} : vector<3x1280xf32>, vector<1280x128xf32>, vector<3x128xf32> -> vector<3x128xf32>
    %cst_5 = arith.constant 0.000000e+00 : f32
    %5 = vector.broadcast %cst_5 : f32 to vector<3x128xf32>
    %6 = arith.maximumf %4, %5 : vector<3x128xf32>
    %c0_6 = arith.constant 0 : index
    %c0_7 = arith.constant 0 : index
    %c0_8 = arith.constant 0 : index
    %7 = vector.load %arg4[%c0_6, %c0_7, %c0_8] : memref<1x3x128xf32, #tpu.memory_space<vmem>>, vector<1x3x128xf32>
    %8 = vector.shape_cast %7 : vector<1x3x128xf32> to vector<3x128xf32>
    %9 = vector.shape_cast %6 : vector<3x128xf32> to vector<1x3x128xf32>
    tpu.vector_store %arg4[%c0_6, %c0_7, %c0_8], %9 {strides = array<i32>} : memref<1x3x128xf32, #tpu.memory_space<vmem>>, vector<1x3x128xf32>,
    return
  }
  func.func @transform_0(%arg0: i32, %arg1: i32) -> (i32, i32, i32) {
    %c0_i32 = arith.constant 0 : i32
    %c0_i32_0 = arith.constant 0 : i32
    %c0_i32_1 = arith.constant 0 : i32
    return %arg0, %c0_i32, %c0_i32_0 : i32, i32, i32
  }
  func.func @transform_1(%arg0: i32, %arg1: i32) -> (i32, i32, i32) {
    %c0_i32 = arith.constant 0 : i32
    %c0_i32_0 = arith.constant 0 : i32
    return %arg0, %c0_i32, %arg1 : i32, i32, i32
  }
  func.func @transform_2(%arg0: i32, %arg1: i32) -> (i32, i32, i32) {
    %c0_i32 = arith.constant 0 : i32
    %c0_i32_0 = arith.constant 0 : i32
    return %arg0, %c0_i32, %arg1 : i32, i32, i32
  }
}

</mosaic_0001>

<bundles_post_ra>
// kernel: tpu_custom_call.1
= control target key start
LH: loop header
LB: loop body
LE: loop exit
PB: predicated region body
PF: predicated region fallthrough
CT: control target
= control target key end

     0   :  { %7 = vsyncpa [#allocation3], 0  ;;  %s1456_s0 = inlined_call_operand.vmem [shape: f32[2,3,1280], index: 0, kind: input, shape index: {}]   ;;  %s1457_s1 = inlined_call_operand.hbm [shape: f32[2,1280,128], index: 1, kind: input, shape index: {}]   ;;  %s1458_s2 = inlined_call_operand.vmem [shape: f32[2,3,128], index: 2, kind: output, shape index: {}]  }
   0x1   :  { %9 = vsyncpa [#allocation3 + $0x1], 0  ;;  %s1183_s9 = smov 0   ;;  %s1185_s10 = smov 0  }
   0x2   :  { %s1187_s11 = smov 0   ;;  %s1189_s12 = smov 0  }
   0x3   :  { %s1191_s13 = smov 0   ;;  %s1193_s14 = smov 0  }
   0x4 LB: > { %s834_s15 = sadd.s32 4294967295, %s1163_s14   ;;  %s27_s16 = sadd.s32 1, %s1159_s13  ;;  %s1163_s14 = sphi %s1193_s14, %s15_s14   ;;  %s1159_s13 = sphi %s1191_s13, %s1465_s13   ;;  %s1155_s12 = sphi %s1189_s12, %s1464_s12   ;;  %s1151_s11 = sphi %s1187_s11, %s1463_s11   ;;  %s1147_s10 = sphi %s1185_s10, %s1462_s10   ;;  %s1143_s9 = sphi %s1183_s9, %s1461_s9  }
   0x5   : > { %p29_p0 = scmp.ge.s32.totalorder %s27_s16, 2  ;;  %s62_s17 = sadd.s32 1, %s1151_s11 }
   0x6   : > { %p69_p1 = scmp.ne.s32.totalorder %s1151_s11, %s1147_s10  ;;  %p70_p2 = scmp.eq.s32.totalorder %s1163_s14, 0 }
   0x7   : > { %s1467_s16 = smov (%p29_p0, %s27_s16), 0  ;;  %p75_p4 = scmp.ne.s32.totalorder %s1147_s10, %s1143_s9 }
   0x8   : > { %p71_p3 = por %p70_p2, %p69_p1  ;;  %s57_s18 = ssub.s32 %s1159_s13, %s1467_s16 }
   0x9   : > { %p76_p5 = scmp.eq.s32.totalorder %s834_s15, 0  ;;  %p60_p6 = scmp.eq.s32.totalorder %s57_s18, 0 }
   0xa   : > { %p1029_p8 = scmp.lt.s32.totalorder %s1163_s14, 2  ;;  %s135_s21 = sand.u32 1, %s1151_s11  }
   0xb   : > { %p1222_p7 = por %p76_p5, %p75_p4  ;;  %s1020_s22 = smul.u32 20480, %s1159_s13 }
   0xc   : > { %s1228_s20 = scalar_select %p60_p6, %s1151_s11, %s62_s17  }
   0xd   : > { %s1019_s23 = smul.u32 1280, %s135_s21  ;;  %s146_s26 = scalar_lea.hbm %s1457_s1, %s1020_s22 }
   0xe   : > { %p1235_p9 = pnand %p1029_p8, %p71_p3  ;;  %s136_s30 = scalar_lea.sflag [#allocation3], %s135_s21 }
   0xf   : > { %s139_s28 = scalar_lea.vmem [#allocation2], %s1019_s23  ;;  %s1165_s4 = smov [#allocation2]  }
  0x10   : > { %s147_s29 = sshll.u32 %s139_s28, 4  ;;  %p1087_p10 = pneg %p1235_p9  ;;  %s148_s29 = int_to_ptr.vmem [resolvable:$true] %s147_s29 }
  0x11   : > { %s1098_s3 = scalar_lea.vmem %s148_s29, 20480  ;;  %s1103_s5 = sshll.u32 %s1165_s4, 4  ;;  %s1104_s5 = int_to_ptr.vmem [resolvable:$false] %s1103_s5 }
  0x12   : > { %p1099_p11 = scmp.ne.s32.totalorder %s148_s29, %s1098_s3  ;;  %s1105_s6 = scalar_lea.vmem %s1104_s5, 40960 }
  0x13   : > { %p1106_p0 = scmp.lt.s32.totalorder %s148_s29, %s1104_s5  ;;  %p1107_p1 = scmp.lt.s32.totalorder %s1105_s6, %s1098_s3 }
  0x14   : > { %p1101_p12 = pnand %p1099_p11, %p1087_p10 }
  0x15   : > { %p1108_p2 = por %p1107_p1, %p1106_p0 }
  0x16   : > { %p1102_p13 = pneg %p1101_p12 }
  0x18   : > { %p1109_p3 = pnand %p1108_p2, %p1102_p13 }
  0x1a   : > { %1112 = shalt.err (!%p1109_p3)
}
  0x1b   : > { %s1166_s7 = smov 128   ;;  %s1167_s8 = smov 8  }
  0x1c   : > { %1028 = dma.hbm_to_vmem [thread:$0]  (!%p1235_p9), %s146_s26, 20480, %s148_s29, %s136_s30, %s1166_s7, %s1166_s7, %s1167_s8  }
  0x1d   : > { %p839_p4 = scmp.ge.s32.totalorder %s1163_s14, 1  ;;  %p155_p5 = scmp.lt.s32.totalorder %s1163_s14, 3 }
  0x1f   : > { %p156_p6 = pnand %p839_p4, %p155_p5 }
  0x20   : > { %s161_s9 = sand.u32 (!%p156_p6), 1, %s1147_s10  }
  0x21   : > { %159 = sbr.rel (%p156_p6) target bundleno = 342 (0x156), region = 28  ;;  %s162_s17 = scalar_lea.sflag (!%p156_p6), [#allocation3], %s161_s9 }
  0x22   : > { %s1021_s15 = smul.u32 (!%p156_p6), 1280, %s161_s9 }
  0x24   : > { %s1246_s18 = scalar_lea.vmem (!%p156_p6), [#allocation2], %s1021_s15 }
  0x26   : > { %1138 = dma.done.wait (%p1222_p7), %s162_s17, 20480  }
  0x27   : > { %1140 = vsyncadd (%p1222_p7), %s162_s17, 4294946816  ;;  %v241_v0 = vld [vmem:[%s1246_s18 + $0xf8] sm:$0xff]  ;;  %v240_v4 = vld [vmem:[%s1246_s18 + $0xf0] sm:$0xff]  ;;  %p193_p7 = scmp.lt.s32.totalorder %s1155_s12, 1 }
  0x28   : > { %v273_v1 = vld [vmem:[%s1246_s18 + $0x1f8] sm:$0xff]  ;;  %844 = vmatprep.subr.mxu0 %v241_v0  ;;  %v272_v5 = vld [vmem:[%s1246_s18 + $0x1f0] sm:$0xff]  ;;  %v239_v8 = vld [vmem:[%s1246_s18 + $0xe8] sm:$0xff] }
  0x29   : > { %v225_v2 = vld [vmem:[%s1246_s18 + $0x78] sm:$0xff]  ;;  %879 = vmatprep.subr.mxu1 %v273_v1  ;;  %v224_v6 = vld [vmem:[%s1246_s18 + $0x70] sm:$0xff]  ;;  %v271_v9 = vld [vmem:[%s1246_s18 + $0x1e8] sm:$0xff]  ;;  %s1469_s12 = smov (!%p193_p7, %s1155_s12), 1 }
  0x2a   : > { %v257_v3 = vld [vmem:[%s1246_s18 + $0x178] sm:$0xff]  ;;  %845 = vmatpush3.msra.mxu0 %v225_v2  ;;  %v256_v7 = vld [vmem:[%s1246_s18 + $0x170] sm:$0xff]  ;;  %v223_v10 = vld [vmem:[%s1246_s18 + $0x68] sm:$0xff]  ;;  %s1022_s19 = smul.u32 40, %s1469_s12  ;;  %s841_s24 = sshll.u32 %s1469_s12, 2 }
  0x2b   : > { %880 = vmatpush3.msra.mxu1 %v257_v3  ;;  %846 = vmatprep.subr.mxu0 %v240_v4  ;;  %v255_v11 = vld [vmem:[%s1246_s18 + $0x168] sm:$0xff]  ;;  %v238_v12 = vld [vmem:[%s1246_s18 + $0xe0] sm:$0xff]  ;;  %v237_v16 = vld [vmem:[%s1246_s18 + $0xd8] sm:$0xff]  ;;  %s204_s27 = scalar_lea.vmem %s1458_s2, %s841_s24 }
  0x2c   : > { %881 = vmatprep.subr.mxu1 %v272_v5  ;;  %847 = vmatpush3.msra.mxu0 %v224_v6  ;;  %v270_v13 = vld [vmem:[%s1246_s18 + $0x1e0] sm:$0xff]  ;;  %v269_v17 = vld [vmem:[%s1246_s18 + $0x1d8] sm:$0xff]  ;;  %v236_v20 = vld [vmem:[%s1246_s18 + $0xd0] sm:$0xff]  ;;  %s1312_s23 = scalar_lea.vmem %s1456_s0, %s1022_s19 }
  0x2d   : > { %882 = vmatpush3.msra.mxu1 %v256_v7  ;;  %848 = vmatprep.subr.mxu0 %v239_v8  ;;  %v222_v14 = vld [vmem:[%s1246_s18 + $0x60] sm:$0xff]  ;;  %v221_v18 = vld [vmem:[%s1246_s18 + $0x58] sm:$0xff]  ;;  %v268_v21 = vld [vmem:[%s1246_s18 + $0x1d0] sm:$0xff] }
  0x2e   : > { %883 = vmatprep.subr.mxu1 %v271_v9  ;;  %v254_v15 = vld [vmem:[%s1246_s18 + $0x160] sm:$0xff]  ;;  %849 = vmatpush3.msra.mxu0 %v223_v10  ;;  %v253_v19 = vld [vmem:[%s1246_s18 + $0x158] sm:$0xff]  ;;  %v220_v22 = vld [vmem:[%s1246_s18 + $0x50] sm:$0xff] }
  0x2f   : > { %884 = vmatpush3.msra.mxu1 %v255_v11  ;;  %850 = vmatprep.subr.mxu0 %v238_v12  ;;  %v252_v23 = vld [vmem:[%s1246_s18 + $0x150] sm:$0xff]  ;;  %v235_v24 = vld [vmem:[%s1246_s18 + $0xc8] sm:$0xff]  ;;  %v234_v28 = vld [vmem:[%s1246_s18 + $0xc0] sm:$0xff] }
  0x30   : > { %885 = vmatprep.subr.mxu1 %v270_v13  ;;  %851 = vmatpush3.msra.mxu0 %v222_v14  ;;  %v267_v25 = vld [vmem:[%s1246_s18 + $0x1c8] sm:$0xff]  ;;  %v266_v29 = vld [vmem:[%s1246_s18 + $0x1c0] sm:$0xff]  ;;  %v233_v32 = vld [vmem:[%s1246_s18 + $0xb8] sm:$0xff] }
  0x31   : > { %886 = vmatpush3.msra.mxu1 %v254_v15  ;;  %852 = vmatprep.subr.mxu0 %v237_v16  ;;  %v219_v26 = vld [vmem:[%s1246_s18 + $0x48] sm:$0xff]  ;;  %v218_v30 = vld [vmem:[%s1246_s18 + $0x40] sm:$0xff]  ;;  %v265_v33 = vld [vmem:[%s1246_s18 + $0x1b8] sm:$0xff] }
  0x32   : > { %887 = vmatprep.subr.mxu1 %v269_v17  ;;  %853 = vmatpush3.msra.mxu0 %v221_v18  ;;  %v251_v27 = vld [vmem:[%s1246_s18 + $0x148] sm:$0xff]  ;;  %v250_v31 = vld [vmem:[%s1246_s18 + $0x140] sm:$0xff]  ;;  %v217_v34 = vld [vmem:[%s1246_s18 + $0x38] sm:$0xff] }
  0x33   : > { %888 = vmatpush3.msra.mxu1 %v253_v19  ;;  %854 = vmatprep.subr.mxu0 %v236_v20  ;;  %v249_v35 = vld [vmem:[%s1246_s18 + $0x138] sm:$0xff]  ;;  %v232_v36 = vld [vmem:[%s1246_s18 + $0xb0] sm:$0xff]  ;;  %v231_v40 = vld [vmem:[%s1246_s18 + $0xa8] sm:$0xff] }
  0x34   : > { %889 = vmatprep.subr.mxu1 %v268_v21  ;;  %855 = vmatpush3.msra.mxu0 %v220_v22  ;;  %v264_v37 = vld [vmem:[%s1246_s18 + $0x1b0] sm:$0xff]  ;;  %v263_v41 = vld [vmem:[%s1246_s18 + $0x1a8] sm:$0xff]  ;;  %v230_v44 = vld [vmem:[%s1246_s18 + $0xa0] sm:$0xff] }
  0x35   : > { %890 = vmatpush3.msra.mxu1 %v252_v23  ;;  %856 = vmatprep.subr.mxu0 %v235_v24  ;;  %v216_v38 = vld [vmem:[%s1246_s18 + $0x30] sm:$0xff]  ;;  %v215_v42 = vld [vmem:[%s1246_s18 + $0x28] sm:$0xff]  ;;  %v262_v45 = vld [vmem:[%s1246_s18 + $0x1a0] sm:$0xff] }
  0x36   : > { %891 = vmatprep.subr.mxu1 %v267_v25  ;;  %857 = vmatpush3.msra.mxu0 %v219_v26  ;;  %v248_v39 = vld [vmem:[%s1246_s18 + $0x130] sm:$0xff]  ;;  %v247_v43 = vld [vmem:[%s1246_s18 + $0x128] sm:$0xff]  ;;  %v214_v46 = vld [vmem:[%s1246_s18 + $0x20] sm:$0xff] }
  0x37   : > { %892 = vmatpush3.msra.mxu1 %v251_v27  ;;  %858 = vmatprep.subr.mxu0 %v234_v28  ;;  %v246_v47 = vld [vmem:[%s1246_s18 + $0x120] sm:$0xff]  ;;  %v229_v48 = vld [vmem:[%s1246_s18 + $0x98] sm:$0xff]  ;;  %v228_v52 = vld [vmem:[%s1246_s18 + $0x90] sm:$0xff] }
  0x38   : > { %893 = vmatprep.subr.mxu1 %v266_v29  ;;  %859 = vmatpush3.msra.mxu0 %v218_v30  ;;  %v261_v49 = vld [vmem:[%s1246_s18 + $0x198] sm:$0xff]  ;;  %v260_v53 = vld [vmem:[%s1246_s18 + $0x190] sm:$0xff]  ;;  %v205_v56 = vld [vmem:[%s1312_s23] sm:$0x77] }
  0x39   : > { %894 = vmatpush3.msra.mxu1 %v250_v31  ;;  %860 = vmatprep.subr.mxu0 %v233_v32  ;;  %v213_v50 = vld [vmem:[%s1246_s18 + $0x18] sm:$0xff]  ;;  %v212_v54 = vld [vmem:[%s1246_s18 + $0x10] sm:$0xff]  ;;  %v227_v57 = vld [vmem:[%s1246_s18 + $0x88] sm:$0xff]  ;;  %v375_v0 = vcombine.high %v205_v56, %v205_v56 }
  0x3a   : > { %895 = vmatprep.subr.mxu1 %v265_v33  ;;  %861 = vmatpush3.msra.mxu0 %v217_v34  ;;  %v245_v51 = vld [vmem:[%s1246_s18 + $0x118] sm:$0xff]  ;;  %v244_v55 = vld [vmem:[%s1246_s18 + $0x110] sm:$0xff]  ;;  %v259_v58 = vld [vmem:[%s1246_s18 + $0x188] sm:$0xff] }
  0x3b   : > { %896 = vmatpush3.msra.mxu1 %v249_v35  ;;  %862 = vmatprep.subr.mxu0 %v232_v36  ;;  %v206_v59 = vld [vmem:[%s1312_s23 + $0x8] sm:$0x77]  ;;  %v226_v62 = vld [vmem:[%s1246_s18 + $0x80] sm:$0xff]  ;;  %v305_v4 = vld [vmem:[%s1246_s18 + $0x2f8] sm:$0xff] }
  0x3c   : > { %897 = vmatprep.subr.mxu1 %v264_v37  ;;  %863 = vmatpush3.msra.mxu0 %v216_v38  ;;  %v211_v60 = vld [vmem:[%s1246_s18 + $0x8] sm:$0xff]  ;;  %v258_v63 = vld [vmem:[%s1246_s18 + $0x180] sm:$0xff]  ;;  %v376_v2 = vcombine.high %v206_v59, %v206_v59  ;;  %v337_v5 = vld [vmem:[%s1246_s18 + $0x3f8] sm:$0xff] }
  0x3d   : > { %898 = vmatpush3.msra.mxu1 %v248_v39  ;;  %864 = vmatprep.subr.mxu0 %v231_v40  ;;  %v243_v61 = vld [vmem:[%s1246_s18 + $0x108] sm:$0xff]  ;;  %v210_v1 = vld [vmem:[%s1246_s18] sm:$0xff]  ;;  %v289_v6 = vld [vmem:[%s1246_s18 + $0x278] sm:$0xff] }
  0x3e   : > { %899 = vmatprep.subr.mxu1 %v263_v41  ;;  %865 = vmatpush3.msra.mxu0 %v215_v42  ;;  %v242_v3 = vld [vmem:[%s1246_s18 + $0x100] sm:$0xff]  ;;  %v321_v7 = vld [vmem:[%s1246_s18 + $0x378] sm:$0xff]  ;;  %v304_v8 = vld [vmem:[%s1246_s18 + $0x2f0] sm:$0xff] }
  0x3f   : > { %900 = vmatpush3.msra.mxu1 %v247_v43  ;;  %866 = vmatprep.subr.mxu0 %v230_v44  ;;  %v336_v9 = vld [vmem:[%s1246_s18 + $0x3f0] sm:$0xff]  ;;  %v303_v12 = vld [vmem:[%s1246_s18 + $0x2e8] sm:$0xff]  ;;  %v302_v16 = vld [vmem:[%s1246_s18 + $0x2e0] sm:$0xff] }
  0x40   : > { %901 = vmatprep.subr.mxu1 %v262_v45  ;;  %867 = vmatpush3.msra.mxu0 %v214_v46  ;;  %v288_v10 = vld [vmem:[%s1246_s18 + $0x270] sm:$0xff]  ;;  %v335_v13 = vld [vmem:[%s1246_s18 + $0x3e8] sm:$0xff]  ;;  %v334_v17 = vld [vmem:[%s1246_s18 + $0x3e0] sm:$0xff] }
  0x41   : > { %902 = vmatpush3.msra.mxu1 %v246_v47  ;;  %868 = vmatprep.subr.mxu0 %v229_v48  ;;  %v320_v11 = vld [vmem:[%s1246_s18 + $0x370] sm:$0xff]  ;;  %v287_v14 = vld [vmem:[%s1246_s18 + $0x268] sm:$0xff]  ;;  %v286_v18 = vld [vmem:[%s1246_s18 + $0x260] sm:$0xff] }
  0x42   : > { %903 = vmatprep.subr.mxu1 %v261_v49  ;;  %869 = vmatpush3.msra.mxu0 %v213_v50  ;;  %v319_v15 = vld [vmem:[%s1246_s18 + $0x368] sm:$0xff]  ;;  %v318_v19 = vld [vmem:[%s1246_s18 + $0x360] sm:$0xff]  ;;  %v301_v20 = vld [vmem:[%s1246_s18 + $0x2d8] sm:$0xff] }
  0x43   : > { %904 = vmatpush3.msra.mxu1 %v245_v51  ;;  %870 = vmatprep.subr.mxu0 %v228_v52  ;;  %v333_v21 = vld [vmem:[%s1246_s18 + $0x3d8] sm:$0xff]  ;;  %v300_v24 = vld [vmem:[%s1246_s18 + $0x2d0] sm:$0xff]  ;;  %v299_v28 = vld [vmem:[%s1246_s18 + $0x2c8] sm:$0xff] }
  0x44   : > { %905 = vmatprep.subr.mxu1 %v260_v53  ;;  %871 = vmatpush3.msra.mxu0 %v212_v54  ;;  %v285_v22 = vld [vmem:[%s1246_s18 + $0x258] sm:$0xff]  ;;  %v332_v25 = vld [vmem:[%s1246_s18 + $0x3d0] sm:$0xff]  ;;  %v331_v29 = vld [vmem:[%s1246_s18 + $0x3c8] sm:$0xff] }
  0x45   : > { %906 = vmatpush3.msra.mxu1 %v244_v55  ;;  %872 = vmatprep.subr.mxu0 %v227_v57  ;;  %v317_v23 = vld [vmem:[%s1246_s18 + $0x358] sm:$0xff]  ;;  %v284_v26 = vld [vmem:[%s1246_s18 + $0x250] sm:$0xff]  ;;  %v283_v30 = vld [vmem:[%s1246_s18 + $0x248] sm:$0xff] }
  0x46   : > { %907 = vmatprep.subr.mxu1 %v259_v58  ;;  %873 = vmatpush3.msra.mxu0 %v211_v60  ;;  %v316_v27 = vld [vmem:[%s1246_s18 + $0x350] sm:$0xff]  ;;  %v315_v31 = vld [vmem:[%s1246_s18 + $0x348] sm:$0xff]  ;;  %v298_v32 = vld [vmem:[%s1246_s18 + $0x2c0] sm:$0xff] }
  0x47   : > { %908 = vmatpush3.msra.mxu1 %v243_v61  ;;  %874 = vmatprep.subr.mxu0 %v226_v62  ;;  %v330_v33 = vld [vmem:[%s1246_s18 + $0x3c0] sm:$0xff]  ;;  %v297_v36 = vld [vmem:[%s1246_s18 + $0x2b8] sm:$0xff]  ;;  %v296_v40 = vld [vmem:[%s1246_s18 + $0x2b0] sm:$0xff] }
  0x48   : > { %909 = vmatprep.subr.mxu1 %v258_v63  ;;  %875 = vmatpush3.msra.mxu0 %v210_v1  ;;  %v282_v34 = vld [vmem:[%s1246_s18 + $0x240] sm:$0xff]  ;;  %v329_v37 = vld [vmem:[%s1246_s18 + $0x3b8] sm:$0xff]  ;;  %v328_v41 = vld [vmem:[%s1246_s18 + $0x3b0] sm:$0xff] }
  0x49   : > { %449 = vmatprep.mubr.f32.mxu0 %v375_v0  ;;  %910 = vmatpush3.msra.mxu1 %v242_v3  ;;  %v314_v35 = vld [vmem:[%s1246_s18 + $0x340] sm:$0xff]  ;;  %v281_v38 = vld [vmem:[%s1246_s18 + $0x238] sm:$0xff]  ;;  %v280_v42 = vld [vmem:[%s1246_s18 + $0x230] sm:$0xff] }
  0x4a   : > { %519 = vmatprep.mubr.f32.mxu1 %v376_v2  ;;  %450 = vmatmul.mubr.f32.vlgmr.msra.gmra.mxu0 %v205_v56  ;;  %v313_v39 = vld [vmem:[%s1246_s18 + $0x338] sm:$0xff]  ;;  %v312_v43 = vld [vmem:[%s1246_s18 + $0x330] sm:$0xff]  ;;  %v295_v44 = vld [vmem:[%s1246_s18 + $0x2a8] sm:$0xff] }
  0x4b   : > { %520 = vmatmul.mubr.f32.vlgmr.msra.gmra.mxu1 %v206_v59  ;;  %914 = vmatprep.subr.mxu0 %v305_v4  ;;  %v327_v45 = vld [vmem:[%s1246_s18 + $0x3a8] sm:$0xff]  ;;  %v294_v48 = vld [vmem:[%s1246_s18 + $0x2a0] sm:$0xff]  ;;  %v293_v52 = vld [vmem:[%s1246_s18 + $0x298] sm:$0xff] }
  0x4c   : > { %949 = vmatprep.subr.mxu1 %v337_v5  ;;  %915 = vmatpush3.msra.mxu0 %v289_v6  ;;  %v279_v46 = vld [vmem:[%s1246_s18 + $0x228] sm:$0xff]  ;;  %v326_v49 = vld [vmem:[%s1246_s18 + $0x3a0] sm:$0xff]  ;;  %v325_v53 = vld [vmem:[%s1246_s18 + $0x398] sm:$0xff] }
  0x4d   : > { %950 = vmatpush3.msra.mxu1 %v321_v7  ;;  %916 = vmatprep.subr.mxu0 %v304_v8  ;;  %v311_v47 = vld [vmem:[%s1246_s18 + $0x328] sm:$0xff]  ;;  %v278_v50 = vld [vmem:[%s1246_s18 + $0x220] sm:$0xff]  ;;  %v277_v54 = vld [vmem:[%s1246_s18 + $0x218] sm:$0xff] }
  0x4e   : > { %951 = vmatprep.subr.mxu1 %v336_v9  ;;  %917 = vmatpush3.msra.mxu0 %v288_v10  ;;  %v310_v51 = vld [vmem:[%s1246_s18 + $0x320] sm:$0xff]  ;;  %v309_v55 = vld [vmem:[%s1246_s18 + $0x318] sm:$0xff]  ;;  %v207_v56 = vld [vmem:[%s1312_s23 + $0x10] sm:$0x77] }
  0x4f   : > { %952 = vmatpush3.msra.mxu1 %v320_v11  ;;  %918 = vmatprep.subr.mxu0 %v303_v12  ;;  %v292_v57 = vld [vmem:[%s1246_s18 + $0x290] sm:$0xff]  ;;  %v291_v61 = vld [vmem:[%s1246_s18 + $0x288] sm:$0xff]  ;;  %v377_v63 = vcombine.high %v207_v56, %v207_v56  ;;  %v208_v1 = vld [vmem:[%s1312_s23 + $0x18] sm:$0x77] }
  0x50   : > { %953 = vmatprep.subr.mxu1 %v335_v13  ;;  %919 = vmatpush3.msra.mxu0 %v287_v14  ;;  %v324_v58 = vld [vmem:[%s1246_s18 + $0x390] sm:$0xff]  ;;  %v323_v62 = vld [vmem:[%s1246_s18 + $0x388] sm:$0xff]  ;;  %v290_v2 = vld [vmem:[%s1246_s18 + $0x280] sm:$0xff]  ;;  %v378_v8 = vcombine.high %v208_v1, %v208_v1 }
  0x51   : > { %954 = vmatpush3.msra.mxu1 %v319_v15  ;;  %920 = vmatprep.subr.mxu0 %v302_v16  ;;  %v276_v59 = vld [vmem:[%s1246_s18 + $0x210] sm:$0xff]  ;;  %v275_v0 = vld [vmem:[%s1246_s18 + $0x208] sm:$0xff]  ;;  %v274_v4 = vld [vmem:[%s1246_s18 + $0x200] sm:$0xff] }
  0x52   : > { %955 = vmatprep.subr.mxu1 %v334_v17  ;;  %921 = vmatpush3.msra.mxu0 %v286_v18  ;;  %v308_v60 = vld [vmem:[%s1246_s18 + $0x310] sm:$0xff]  ;;  %v307_v3 = vld [vmem:[%s1246_s18 + $0x308] sm:$0xff]  ;;  %v322_v5 = vld [vmem:[%s1246_s18 + $0x380] sm:$0xff] }
  0x53   : > { %956 = vmatpush3.msra.mxu1 %v318_v19  ;;  %922 = vmatprep.subr.mxu0 %v301_v20  ;;  %v1396_v6 = vld [vmem:[%s1312_s23 + $0x20] sm:$0x77]  ;;  %v369_v7 = vld [vmem:[%s1246_s18 + $0x4f8] sm:$0xff]  ;;  %v368_v12 = vld [vmem:[%s1246_s18 + $0x4f0] sm:$0xff] }
  0x54   : > { %957 = vmatprep.subr.mxu1 %v333_v21  ;;  %923 = vmatpush3.msra.mxu0 %v285_v22  ;;  %v306_v9 = vld [vmem:[%s1246_s18 + $0x300] sm:$0xff]  ;;  %v353_v10 = vld [vmem:[%s1246_s18 + $0x478] sm:$0xff]  ;;  %v379_v11 = vcombine.high %v1396_v6, %v1396_v6  ;;  %v352_v13 = vld [vmem:[%s1246_s18 + $0x470] sm:$0xff] }
  0x55   : > { %958 = vmatpush3.msra.mxu1 %v317_v23  ;;  %924 = vmatprep.subr.mxu0 %v300_v24  ;;  %v367_v14 = vld [vmem:[%s1246_s18 + $0x4e8] sm:$0xff]  ;;  %v366_v16 = vld [vmem:[%s1246_s18 + $0x4e0] sm:$0xff]  ;;  %v365_v18 = vld [vmem:[%s1246_s18 + $0x4d8] sm:$0xff] }
  0x56   : > { %959 = vmatprep.subr.mxu1 %v332_v25  ;;  %925 = vmatpush3.msra.mxu0 %v284_v26  ;;  %v351_v15 = vld [vmem:[%s1246_s18 + $0x468] sm:$0xff]  ;;  %v350_v17 = vld [vmem:[%s1246_s18 + $0x460] sm:$0xff]  ;;  %v349_v19 = vld [vmem:[%s1246_s18 + $0x458] sm:$0xff] }
  0x57   : > { %960 = vmatpush3.msra.mxu1 %v316_v27  ;;  %926 = vmatprep.subr.mxu0 %v299_v28  ;;  %v364_v20 = vld [vmem:[%s1246_s18 + $0x4d0] sm:$0xff]  ;;  %v363_v22 = vld [vmem:[%s1246_s18 + $0x4c8] sm:$0xff]  ;;  %v362_v24 = vld [vmem:[%s1246_s18 + $0x4c0] sm:$0xff] }
  0x58   : > { %961 = vmatprep.subr.mxu1 %v331_v29  ;;  %927 = vmatpush3.msra.mxu0 %v283_v30  ;;  %v348_v21 = vld [vmem:[%s1246_s18 + $0x450] sm:$0xff]  ;;  %v347_v23 = vld [vmem:[%s1246_s18 + $0x448] sm:$0xff]  ;;  %v346_v25 = vld [vmem:[%s1246_s18 + $0x440] sm:$0xff] }
  0x59   : > { %962 = vmatpush3.msra.mxu1 %v315_v31  ;;  %928 = vmatprep.subr.mxu0 %v298_v32  ;;  %v361_v26 = vld [vmem:[%s1246_s18 + $0x4b8] sm:$0xff]  ;;  %v360_v28 = vld [vmem:[%s1246_s18 + $0x4b0] sm:$0xff]  ;;  %v359_v30 = vld [vmem:[%s1246_s18 + $0x4a8] sm:$0xff] }
  0x5a   : > { %963 = vmatprep.subr.mxu1 %v330_v33  ;;  %929 = vmatpush3.msra.mxu0 %v282_v34  ;;  %v345_v27 = vld [vmem:[%s1246_s18 + $0x438] sm:$0xff]  ;;  %v344_v29 = vld [vmem:[%s1246_s18 + $0x430] sm:$0xff]  ;;  %v343_v31 = vld [vmem:[%s1246_s18 + $0x428] sm:$0xff] }
  0x5b   : > { %964 = vmatpush3.msra.mxu1 %v314_v35  ;;  %930 = vmatprep.subr.mxu0 %v297_v36  ;;  %v358_v32 = vld [vmem:[%s1246_s18 + $0x4a0] sm:$0xff]  ;;  %v357_v34 = vld [vmem:[%s1246_s18 + $0x498] sm:$0xff]  ;;  %v356_v36 = vld [vmem:[%s1246_s18 + $0x490] sm:$0xff] }
  0x5c   : > { %965 = vmatprep.subr.mxu1 %v329_v37  ;;  %931 = vmatpush3.msra.mxu0 %v281_v38  ;;  %v342_v33 = vld [vmem:[%s1246_s18 + $0x420] sm:$0xff]  ;;  %v341_v35 = vld [vmem:[%s1246_s18 + $0x418] sm:$0xff]  ;;  %v340_v37 = vld [vmem:[%s1246_s18 + $0x410] sm:$0xff] }
  0x5d   : > { %966 = vmatpush3.msra.mxu1 %v313_v39  ;;  %932 = vmatprep.subr.mxu0 %v296_v40  ;;  %v355_v38 = vld [vmem:[%s1246_s18 + $0x488] sm:$0xff]  ;;  %v354_v40 = vld [vmem:[%s1246_s18 + $0x480] sm:$0xff] }
  0x5e   : > { %967 = vmatprep.subr.mxu1 %v328_v41  ;;  %933 = vmatpush3.msra.mxu0 %v280_v42  ;;  %v339_v39 = vld [vmem:[%s1246_s18 + $0x408] sm:$0xff]  ;;  %v338_v41 = vld [vmem:[%s1246_s18 + $0x400] sm:$0xff] }
  0x5f   : > { %968 = vmatpush3.msra.mxu1 %v312_v43  ;;  %934 = vmatprep.subr.mxu0 %v295_v44 }
  0x60   : > { %969 = vmatprep.subr.mxu1 %v327_v45  ;;  %935 = vmatpush3.msra.mxu0 %v279_v46 }
  0x61   : > { %970 = vmatpush3.msra.mxu1 %v311_v47  ;;  %936 = vmatprep.subr.mxu0 %v294_v48 }
  0x62   : > { %971 = vmatprep.subr.mxu1 %v326_v49  ;;  %937 = vmatpush3.msra.mxu0 %v278_v50 }
  0x63   : > { %972 = vmatpush3.msra.mxu1 %v310_v51  ;;  %938 = vmatprep.subr.mxu0 %v293_v52 }
  0x64   : > { %973 = vmatprep.subr.mxu1 %v325_v53  ;;  %939 = vmatpush3.msra.mxu0 %v277_v54 }
  0x65   : > { %974 = vmatpush3.msra.mxu1 %v309_v55  ;;  %940 = vmatprep.subr.mxu0 %v292_v57 }
  0x66   : > { %975 = vmatprep.subr.mxu1 %v324_v58  ;;  %941 = vmatpush3.msra.mxu0 %v276_v59 }
  0x67   : > { %976 = vmatpush3.msra.mxu1 %v308_v60  ;;  %942 = vmatprep.subr.mxu0 %v291_v61 }
  0x68   : > { %977 = vmatprep.subr.mxu1 %v323_v62  ;;  %943 = vmatpush3.msra.mxu0 %v275_v0 }
  0x69   : > { %589 = vmatprep.mubr.f32.mxu0 %v377_v63  ;;  %944 = vmatprep.subr.mxu0 %v290_v2 }
  0x6a   : > { %978 = vmatpush3.msra.mxu1 %v307_v3  ;;  %945 = vmatpush3.msra.mxu0 %v274_v4 }
  0x6b   : > { %979 = vmatprep.subr.mxu1 %v322_v5  ;;  %590 = vmatmul.mubr.f32.vlgmr.msra.gmra.mxu0 %v207_v56 }
  0x6c   : > { %984 = vmatprep.subr.mxu0 %v369_v7  ;;  %980 = vmatpush3.msra.mxu1 %v306_v9 }
  0x6d   : > { %659 = vmatprep.mubr.f32.mxu1 %v378_v8  ;;  %985 = vmatpush3.msra.mxu0 %v353_v10 }
  0x6e   : > { %660 = vmatmul.mubr.f32.vlgmr.msra.gmra.mxu1 %v208_v1  ;;  %986 = vmatprep.subr.mxu0 %v368_v12 }
  0x6f   : > { %729 = vmatprep.mubr.f32.mxu0 %v379_v11  ;;  %987 = vmatpush3.msra.mxu0 %v352_v13 }
  0x70   : > { %988 = vmatprep.subr.mxu0 %v367_v14 }
  0x71   : > { %989 = vmatpush3.msra.mxu0 %v351_v15 }
  0x72   : > { %990 = vmatprep.subr.mxu0 %v366_v16 }
  0x73   : > { %991 = vmatpush3.msra.mxu0 %v350_v17 }
  0x74   : > { %992 = vmatprep.subr.mxu0 %v365_v18 }
  0x75   : > { %993 = vmatpush3.msra.mxu0 %v349_v19 }
  0x76   : > { %994 = vmatprep.subr.mxu0 %v364_v20 }
  0x77   : > { %995 = vmatpush3.msra.mxu0 %v348_v21 }
  0x78   : > { %996 = vmatprep.subr.mxu0 %v363_v22 }
  0x79   : > { %997 = vmatpush3.msra.mxu0 %v347_v23 }
  0x7a   : > { %998 = vmatprep.subr.mxu0 %v362_v24 }
  0x7b   : > { %999 = vmatpush3.msra.mxu0 %v346_v25 }
  0x7c   : > { %1000 = vmatprep.subr.mxu0 %v361_v26 }
  0x7d   : > { %1001 = vmatpush3.msra.mxu0 %v345_v27 }
  0x7e   : > { %1002 = vmatprep.subr.mxu0 %v360_v28 }
  0x7f   : > { %1003 = vmatpush3.msra.mxu0 %v344_v29 }
  0x80   : > { %1004 = vmatprep.subr.mxu0 %v359_v30 }
  0x81   : > { %1005 = vmatpush3.msra.mxu0 %v343_v31 }
  0x82   : > { %1006 = vmatprep.subr.mxu0 %v358_v32 }
  0x83   : > { %1007 = vmatpush3.msra.mxu0 %v342_v33 }
  0x84   : > { %1008 = vmatprep.subr.mxu0 %v357_v34 }
  0x85   : > { %1009 = vmatpush3.msra.mxu0 %v341_v35 }
  0x86   : > { %1010 = vmatprep.subr.mxu0 %v356_v36 }
  0x87   : > { %1011 = vmatpush3.msra.mxu0 %v340_v37 }
  0x88   : > { %1012 = vmatprep.subr.mxu0 %v355_v38 }
  0x89   : > { %1013 = vmatpush3.msra.mxu0 %v339_v39 }
  0x8a   : > { %1014 = vmatprep.subr.mxu0 %v354_v40 }
  0x8b   : > { %1015 = vmatpush3.msra.mxu0 %v338_v41 }
  0x8c   : > { %730 = vmatmul.mubr.f32.vlgmr.msra.gmra.mxu0 %v1396_v6 }
 0x10a   : > { %v876_v42 = vpop.f32.mrf.mxu0 }
 0x10b   : > { %v911_v43 = vpop.f32.mrf.mxu1 }
 0x10c   : > { %v877_v44 = vpop.f32.mrf.mxu0 }
 0x10d   : > { %v912_v46 = vpop.f32.mrf.mxu1  ;;  %v878_v49 = vadd.f32 %v877_v44, %v876_v42 }
 0x10e   : > { %v913_v50 = vadd.f32 %v912_v46, %v911_v43 }
 0x110   : > { %v522_v53 = vadd.f32 %v913_v50, %v878_v49 }
 0x12b   : > { %v946_v45 = vpop.f32.mrf.mxu0 }
 0x12d   : > { %v947_v47 = vpop.f32.mrf.mxu0 }
 0x12e   : > { %v981_v48 = vpop.f32.mrf.mxu1  ;;  %v948_v51 = vadd.f32 %v947_v47, %v946_v45 }
 0x130   : > { %v982_v52 = vpop.f32.mrf.mxu1  ;;  %v592_v54 = vadd.f32 %v948_v51, %v522_v53 }
 0x131   : > { %v983_v55 = vadd.f32 %v982_v52, %v981_v48 }
 0x133   : > { %v662_v58 = vadd.f32 %v983_v55, %v592_v54 }
 0x14c   : > { %v1016_v56 = vpop.f32.mrf.mxu0 }
 0x14e   : > { %v1017_v57 = vpop.f32.mrf.mxu0 }
 0x14f   : > { %v1018_v59 = vadd.f32 %v1017_v57, %v1016_v56 }
 0x151   : > { %v732_v60 = vadd.f32 %v1018_v59, %v662_v58 }
 0x153   : > { %v735_v61 = vmax.f32 %v732_v60, 0.0 }
 0x155   : > { %736 = vst [vmem:[%s204_s27] sm:$0x7] %v735_v61 }
 0x156 PF: > { %s15_s14 = sadd.s32 1, %s1163_s14   ;;  %s1461_s9 = smov %s1147_s10 }
 0x157   : > { %p12_p8 = scmp.ge.s32.totalorder %s15_s14, 4   ;;  %s1462_s10 = smov %s1151_s11 }
 0x158   : > { %s1463_s11 = smov %s1228_s20  ;;  %s1464_s12 = smov %s1159_s13 }
 0x159   : > { %s1465_s13 = smov %s1467_s16  ;;  %14 = sbr.rel (!%p12_p8) target bundleno = 4 (0x4), region = 71 }
 0x15e   :  { %762 = vsyncpa [#allocation3], 1 }
 0x15f   :  { %764 = vsyncpa [#allocation3 + $0x1], 1 }

</bundles_post_ra>
